<compile_context>
chip_gen: v7x
topology: tpu7x:2x2x1
jax: 0.10.0
libtpu: 0.0.40
codegen_flags: <defaults>
</compile_context>

<pallas_src>
import functools
import math

import jax
import jax.numpy as jnp
import numpy as np
from jax import lax
from jax.experimental import pallas as pl
from jax.experimental.pallas import tpu as pltpu


# ---------------------------------------------------------------------------
# Generation-aware sizing helpers
# ---------------------------------------------------------------------------

def _device_kind():
    try:
        return jax.devices()[0].device_kind.lower()
    except Exception:
        return ""


def _vmem_capacity_bytes():
    kind = _device_kind()
    if "v7" in kind:
        return 64 << 20       # v7x: 64 MiB per TensorCore
    return 128 << 20          # v5e / v6e


def _default_bf16_exp():
    kind = _device_kind()
    # v6e / v7x have a bf16 EUP path (~2x exp rate); older generations do not.
    return any(g in kind for g in ("v6", "v7"))


def _attn_footprint_bytes(TQ, S, D, H, with_attn, attn_bytes):
    """Rough per-step VMEM footprint of the attention kernel (double-buffered
    blocks + resident weights + in-kernel f32 temporaries)."""
    bf2, f4, i1 = 2, 4, 1
    need = 0
    need += 2 * TQ * D * bf2                 # q tile
    need += 2 * 2 * S * D * bf2              # kproj + vproj tiles
    need += 2 * TQ * S * i1                  # mask tile (int8)
    need += 2 * (D * D * bf2 + D * f4)       # Wq^T + bq (resident, 2-buffered)
    need += 2 * TQ * D * f4                  # ctx out tile (f32)
    if with_attn:
        need += 2 * H * TQ * S * attn_bytes  # attention-weights out tile
    # In-kernel temporaries: Q / mask_bias / score / exp / attn + ctx parts.
    need += 4 * TQ * S * f4 + 3 * TQ * D * f4
    return need


def _pick_q_tile(S, D, n_head, with_attn, attn_bytes, budget):
    """Largest 128-multiple divisor of S whose footprint fits the budget."""
    if S <= 256:
        return S
    cands = [t for t in (512, 256, 128) if S % t == 0]
    if not cands:
        return S
    for tq in cands:  # largest first
        if _attn_footprint_bytes(tq, S, D, n_head, with_attn, attn_bytes) <= budget:
            return tq
    return cands[-1]


def _pick_seq_tile(S):
    if S <= 512:
        return S
    for ts in (512, 256, 128):
        if S % ts == 0:
            return ts
    return S


# ---------------------------------------------------------------------------
# Stage 1: K / V projections (hoisted out of the attention kernel)
# ---------------------------------------------------------------------------

def _kv_proj_kernel(k_ref, v_ref, wk_ref, bk_ref, wv_ref, bv_ref, kp_ref, vp_ref):
    kp = jnp.dot(k_ref[0], wk_ref[...], preferred_element_type=jnp.float32) + bk_ref[0]
    vp = jnp.dot(v_ref[0], wv_ref[...], preferred_element_type=jnp.float32) + bv_ref[0]
    kp_ref[0] = kp.astype(kp_ref.dtype)
    vp_ref[0] = vp.astype(vp_ref.dtype)


# ---------------------------------------------------------------------------
# Stage 2: Q projection + per-head scaled dot-product attention
# ---------------------------------------------------------------------------

def _attention_kernel(q_ref, kp_ref, vp_ref, mask_ref, wq_ref, bq_ref,
                      *out_refs, n_head, head_dim, with_attn, use_bf16_exp):
    if with_attn:
        ctx_ref, attn_ref = out_refs
    else:
        (ctx_ref,) = out_refs
        attn_ref = None

    scale = 1.0 / (math.sqrt(float(head_dim)) + 1e-8)

    # Q projection for this (TQ, D) tile: bf16 MXU operands, f32 accumulate.
    Q = jnp.dot(q_ref[0], wq_ref[...], preferred_element_type=jnp.float32) + bq_ref[0]
    Q = Q * scale  # fold 1/sqrt(dk) once per tile

    # Additive mask bias, hoisted out of the head loop: one vadd per head
    # instead of compare+select.  Finite -1e30 keeps fully-masked rows NaN-free.
    mask_bias = jnp.where(mask_ref[0] != 0, jnp.float32(-1e30), jnp.float32(0.0))

    kp = kp_ref[0]   # (S, D) bf16
    vp = vp_ref[0]   # (S, D) bf16

    ctx_parts = []
    # TODO(synk): for very large n_head (v7x, 64 MiB VMEM) convert this static
    # loop to lax.fori_loop(..., unroll=True) to bound the live range of the
    # per-head (TQ, S) temporaries.
    for h in range(n_head):
        lo = h * head_dim
        hi = lo + head_dim
        qh = Q[:, lo:hi].astype(jnp.bfloat16)   # (TQ, hd)
        kh = kp[:, lo:hi]                       # (S, hd) bf16
        vh = vp[:, lo:hi]                       # (S, hd) bf16

        # score = qh @ kh^T without materializing a transposed K.
        score = lax.dot_general(qh, kh, (((1,), (1,)), ((), ())),
                                preferred_element_type=jnp.float32)   # (TQ, S)
        score = score + mask_bias

        m = jnp.max(score, axis=-1, keepdims=True)
        shifted = score - m
        if use_bf16_exp:
            # v6e/v7x bf16 EUP path; values are <= 0 post max-subtraction.
            e = jnp.exp(shifted.astype(jnp.bfloat16)).astype(jnp.float32)
        else:
            e = jnp.exp(shifted)
        denom = jnp.sum(e, axis=-1, keepdims=True)
        # Exact reciprocal when the weights are exported (rows sum to ~1);
        # EUP approx path when only the context is needed.
        attn = e * pl.reciprocal(denom, approx=not with_attn)

        if with_attn:
            attn_ref[0, h] = attn.astype(attn_ref.dtype)

        ctx_parts.append(jnp.dot(attn.astype(jnp.bfloat16), vh,
                                 preferred_element_type=jnp.float32))  # (TQ, hd)

    # One lane-dense (TQ, D) store instead of n_head masked partial stores.
    ctx_ref[0] = jnp.concatenate(ctx_parts, axis=-1).astype(ctx_ref.dtype)


# ---------------------------------------------------------------------------
# Wrapper
# ---------------------------------------------------------------------------

def multihead_forward(q, k, v, mask, params, n_head, *, return_attn=False,
                      q_tile=None, attn_dtype=jnp.bfloat16, use_bf16_exp=None):
    """Projections + per-head scaled dot-product attention as Pallas kernels.

    Returns (context: (B, S, D) f32, attention: (B, n_head, S, S) attn_dtype
    or None when return_attn=False)."""
    B, S, D = q.shape
    assert D % n_head == 0
    head_dim = D // n_head
    wq_t, bq, wk_t, bk, wv_t, bv = params

    # bf16 operands for the MXU; also halves HBM read traffic for q/k/v.
    q_bf = q.astype(jnp.bfloat16)
    k_bf = k.astype(jnp.bfloat16)
    v_bf = v.astype(jnp.bfloat16)
    wq_bf = wq_t.astype(jnp.bfloat16)
    wk_bf = wk_t.astype(jnp.bfloat16)
    wv_bf = wv_t.astype(jnp.bfloat16)
    bq = bq.astype(jnp.float32)
    bk = bk.astype(jnp.float32)
    bv = bv.astype(jnp.float32)

    # Mask as int8 (1 == masked): 4x less HBM traffic than float32.  Float
    # masks use `> 0.5` to match the reference semantics.
    if mask.dtype == jnp.bool_:
        mask_i8 = mask.astype(jnp.int8)
    elif jnp.issubdtype(mask.dtype, jnp.floating):
        mask_i8 = (mask > 0.5).astype(jnp.int8)
    else:
        mask_i8 = (mask != 0).astype(jnp.int8)

    if use_bf16_exp is None:
        use_bf16_exp = _default_bf16_exp()

    cap = _vmem_capacity_bytes()
    attn_bytes = jnp.dtype(attn_dtype).itemsize

    TQ = q_tile if q_tile is not None else _pick_q_tile(
        S, D, n_head, return_attn, attn_bytes, int(cap * 0.6))
    assert S % TQ == 0
    q_tiles = S // TQ

    need = _attn_footprint_bytes(TQ, S, D, n_head, return_attn, attn_bytes)
    vmem_limit = int(min(cap - (16 << 20), max(need + (8 << 20), 32 << 20)))
    vmem_limit = max(vmem_limit, 16 << 20)

    # ---- Stage 1: K / V projections (bf16 outputs), grid over (batch, seq) --
    TS = _pick_seq_tile(S)
    kproj, vproj = pl.pallas_call(
        _kv_proj_kernel,
        out_shape=(jax.ShapeDtypeStruct((B, S, D), jnp.bfloat16),
                   jax.ShapeDtypeStruct((B, S, D), jnp.bfloat16)),
        grid=(B, S // TS),
        in_specs=[
            pl.BlockSpec((1, TS, D), lambda b, s: (b, s, 0)),   # k tile (bf16)
            pl.BlockSpec((1, TS, D), lambda b, s: (b, s, 0)),   # v tile (bf16)
            pl.BlockSpec((D, D), lambda b, s: (0, 0)),          # Wk^T
            pl.BlockSpec((1, D), lambda b, s: (0, 0)),          # bk
            pl.BlockSpec((D, D), lambda b, s: (0, 0)),          # Wv^T
            pl.BlockSpec((1, D), lambda b, s: (0, 0)),          # bv
        ],
        out_specs=(pl.BlockSpec((1, TS, D), lambda b, s: (b, s, 0)),
                   pl.BlockSpec((1, TS, D), lambda b, s: (b, s, 0))),
        compiler_params=pltpu.CompilerParams(
            dimension_semantics=("parallel", "parallel"),
            vmem_limit_bytes=vmem_limit),
    )(k_bf, v_bf, wk_bf, bk, wv_bf, bv)

    # ---- Stage 2: Q projection + attention, grid over (batch, q-tiles) ------
    kernel = functools.partial(_attention_kernel, n_head=n_head,
                               head_dim=head_dim, with_attn=return_attn,
                               use_bf16_exp=use_bf16_exp)

    ctx_sds = jax.ShapeDtypeStruct((B, S, D), jnp.float32)
    ctx_spec = pl.BlockSpec((1, TQ, D), lambda b, qi: (b, qi, 0))
    if return_attn:
        out_shape = (ctx_sds,
                     jax.ShapeDtypeStruct((B, n_head, S, S), attn_dtype))
        out_specs = (ctx_spec,
                     pl.BlockSpec((1, n_head, TQ, S), lambda b, qi: (b, 0, qi, 0)))
    else:
        out_shape = ctx_sds
        out_specs = ctx_spec

    outs = pl.pallas_call(
        kernel,
        out_shape=out_shape,
        grid=(B, q_tiles),
        in_specs=[
            pl.BlockSpec((1, TQ, D), lambda b, qi: (b, qi, 0)),   # q tile (bf16)
            pl.BlockSpec((1, S, D), lambda b, qi: (b, 0, 0)),     # Kproj (bf16)
            pl.BlockSpec((1, S, D), lambda b, qi: (b, 0, 0)),     # Vproj (bf16)
            pl.BlockSpec((1, TQ, S), lambda b, qi: (b, qi, 0)),   # mask tile (int8)
            pl.BlockSpec((D, D), lambda b, qi: (0, 0)),           # Wq^T (resident)
            pl.BlockSpec((1, D), lambda b, qi: (0, 0)),           # bq
        ],
        out_specs=out_specs,
        compiler_params=pltpu.CompilerParams(
            # No cross-iteration scratch dependence anymore (K/V projection is
            # hoisted), so both axes are parallel -> v7x 2-TC sharding even at B=1.
            dimension_semantics=("parallel", "parallel"),
            vmem_limit_bytes=vmem_limit),
    )(q_bf, kproj, vproj, mask_i8, wq_bf, bq)

    if return_attn:
        ctx, attn = outs
        return ctx, attn
    return outs, None


# ---------------------------------------------------------------------------
# Reference + test harness
# ---------------------------------------------------------------------------

def _init_linear(key, d_in, d_out):
    """PyTorch nn.Linear default init: U(-1/sqrt(d_in), 1/sqrt(d_in))."""
    kw, kb = jax.random.split(key)
    bound = 1.0 / math.sqrt(d_in)
    W = jax.random.uniform(kw, (d_out, d_in), jnp.float32, -bound, bound)
    b = jax.random.uniform(kb, (1, d_out), jnp.float32, -bound, bound)
    return W, b


def _reference(q, k, v, mask, params, n_head):
    """Pure-JAX f32 reference for the same computation."""
    B, S, D = q.shape
    hd = D // n_head
    wq_t, bq, wk_t, bk, wv_t, bv = params
    Q = q @ wq_t + bq
    K = k @ wk_t + bk
    V = v @ wv_t + bv
    Qh = Q.reshape(B, S, n_head, hd).transpose(0, 2, 1, 3)
    Kh = K.reshape(B, S, n_head, hd).transpose(0, 2, 1, 3)
    Vh = V.reshape(B, S, n_head, hd).transpose(0, 2, 1, 3)
    score = jnp.einsum("bhqd,bhkd->bhqk", Qh, Kh) / (math.sqrt(hd) + 1e-8)
    score = jnp.where(mask[:, None, :, :] > 0.5, -jnp.inf, score)
    attn = jax.nn.softmax(score, axis=-1)
    ctx = jnp.einsum("bhqk,bhkd->bhqd", attn, Vh)
    ctx = ctx.transpose(0, 2, 1, 3).reshape(B, S, D)
    return ctx, attn


if __name__ == "__main__":
    # Small, module-consistent shapes.
    B, S, D = 2, 8, 32
    n_head = 4
    drop_rate = 0.1  # unused in the given forward

    root = jax.random.PRNGKey(0)
    k_q, k_k, k_v, k_wq, k_wk, k_wv, k_wo, k_ln = jax.random.split(root, 8)

    q = jax.random.normal(k_q, (B, S, D), jnp.float32)
    k = jax.random.normal(k_k, (B, S, D), jnp.float32)
    v = jax.random.normal(k_v, (B, S, D), jnp.float32)

    # Causal-style boolean mask (1.0 == masked), broadcast over heads.
    idx = jnp.arange(S)
    mask = (idx[None, :] > idx[:, None]).astype(jnp.float32)
    mask = jnp.broadcast_to(mask[None], (B, S, S))

    # Deterministic parameter init (matches nn.Linear(model_dim, model_dim) shapes).
    Wq, bq = _init_linear(k_wq, D, D)
    Wk, bk = _init_linear(k_wk, D, D)
    Wv, bv = _init_linear(k_wv, D, D)
    # Unused-by-forward parameters, created for shape fidelity with __init__:
    Wo, bo = _init_linear(k_wo, D, D)                     # o_dense
    ln_gamma = jnp.ones((D,), jnp.float32)                # layer_norm.weight
    ln_beta = jnp.zeros((D,), jnp.float32)                # layer_norm.bias

    params = (Wq.T, bq, Wk.T, bk, Wv.T, bv)

    # Full variant (context + attention weights, as `self.attention`).
    ctx, attn = multihead_forward(q, k, v, mask, params, n_head, return_attn=True)
    ctx = jax.block_until_ready(ctx)
    attn = jax.block_until_ready(attn)

    # Context-only variant (default; drops the largest HBM write stream).
    ctx_only, _ = multihead_forward(q, k, v, mask, params, n_head, return_attn=False)
    ctx_only = jax.block_until_ready(ctx_only)

    # Sanity check against a pure-JAX f32 reference (bf16 MXU path => loose tol).
    ctx_ref, attn_ref = _reference(q, k, v, mask, params, n_head)
    assert ctx.shape == (B, S, D) and attn.shape == (B, n_head, S, S)
    np.testing.assert_allclose(np.asarray(ctx), np.asarray(ctx_ref),
                               atol=4e-2, rtol=4e-2)
    np.testing.assert_allclose(np.asarray(attn, dtype=np.float32),
                               np.asarray(attn_ref), atol=4e-2, rtol=4e-2)
    np.testing.assert_allclose(np.asarray(ctx_only), np.asarray(ctx_ref),
                               atol=4e-2, rtol=4e-2)

    print("KERNEL_OK")
</pallas_src>

<mosaic_0001>
module attributes {stable_mosaic.version = 11 : i64} {
  func.func @_kv_proj_kernel(%arg0: i32, %arg1: i32, %arg2: memref<1x8x32xbf16, #tpu.memory_space<vmem>>, %arg3: memref<1x8x32xbf16, #tpu.memory_space<vmem>>, %arg4: memref<32x32xbf16, #tpu.memory_space<vmem>>, %arg5: memref<1x32xf32, #tpu.memory_space<vmem>>, %arg6: memref<32x32xbf16, #tpu.memory_space<vmem>>, %arg7: memref<1x32xf32, #tpu.memory_space<vmem>>, %arg8: memref<1x8x32xbf16, #tpu.memory_space<vmem>>, %arg9: memref<1x8x32xbf16, #tpu.memory_space<vmem>>) attributes {dimension_semantics = [#tpu.dimension_semantics<parallel>, #tpu.dimension_semantics<parallel>], iteration_bounds = array<i64: 2, 1>, scalar_prefetch = 0 : i64, scratch_operands = 0 : i64, tpu.core_type = #tpu.core_type<tc>, window_params = [{transform_indices = @transform_0, window_bounds = array<i64: 1, 8, 32>}, {transform_indices = @transform_1, window_bounds = array<i64: 1, 8, 32>}, {pipeline_mode = #tpu.pipeline_mode<synchronous>, transform_indices = @transform_2, window_bounds = array<i64: 32, 32>}, {pipeline_mode = #tpu.pipeline_mode<synchronous>, transform_indices = @transform_3, window_bounds = array<i64: 1, 32>}, {pipeline_mode = #tpu.pipeline_mode<synchronous>, transform_indices = @transform_4, window_bounds = array<i64: 32, 32>}, {pipeline_mode = #tpu.pipeline_mode<synchronous>, transform_indices = @transform_5, window_bounds = array<i64: 1, 32>}, {transform_indices = @transform_6, window_bounds = array<i64: 1, 8, 32>}, {transform_indices = @transform_7, window_bounds = array<i64: 1, 8, 32>}]} {
    %c0 = arith.constant 0 : index
    %c0_0 = arith.constant 0 : index
    %c0_1 = arith.constant 0 : index
    %0 = vector.load %arg2[%c0, %c0_0, %c0_1] : memref<1x8x32xbf16, #tpu.memory_space<vmem>>, vector<1x8x32xbf16>
    %1 = vector.shape_cast %0 : vector<1x8x32xbf16> to vector<8x32xbf16>
    %c0_2 = arith.constant 0 : index
    %c0_3 = arith.constant 0 : index
    %2 = vector.load %arg4[%c0_2, %c0_3] : memref<32x32xbf16, #tpu.memory_space<vmem>>, vector<32x32xbf16>
    %cst = arith.constant dense<0.000000e+00> : vector<8x32xf32>
    %3 = tpu.matmul %1, %2, %cst {dimension_numbers = #tpu.dot_dimension_numbers<[1], [0], [0], [1], [0, 0, 1, 1], [], []>} : vector<8x32xbf16>, vector<32x32xbf16>, vector<8x32xf32> -> vector<8x32xf32>
    %c0_4 = arith.constant 0 : index
    %c0_5 = arith.constant 0 : index
    %4 = vector.load %arg5[%c0_4, %c0_5] : memref<1x32xf32, #tpu.memory_space<vmem>>, vector<1x32xf32>
    %5 = vector.shape_cast %4 : vector<1x32xf32> to vector<32xf32>
    %6 = vector.shape_cast %5 : vector<32xf32> to vector<1x32xf32>
    %7 = vector.broadcast %6 : vector<1x32xf32> to vector<8x32xf32>
    %8 = arith.addf %3, %7 : vector<8x32xf32>
    %c0_6 = arith.constant 0 : index
    %c0_7 = arith.constant 0 : index
    %c0_8 = arith.constant 0 : index
    %9 = vector.load %arg3[%c0_6, %c0_7, %c0_8] : memref<1x8x32xbf16, #tpu.memory_space<vmem>>, vector<1x8x32xbf16>
    %10 = vector.shape_cast %9 : vector<1x8x32xbf16> to vector<8x32xbf16>
    %c0_9 = arith.constant 0 : index
    %c0_10 = arith.constant 0 : index
    %11 = vector.load %arg6[%c0_9, %c0_10] : memref<32x32xbf16, #tpu.memory_space<vmem>>, vector<32x32xbf16>
    %cst_11 = arith.constant dense<0.000000e+00> : vector<8x32xf32>
    %12 = tpu.matmul %10, %11, %cst_11 {dimension_numbers = #tpu.dot_dimension_numbers<[1], [0], [0], [1], [0, 0, 1, 1], [], []>} : vector<8x32xbf16>, vector<32x32xbf16>, vector<8x32xf32> -> vector<8x32xf32>
    %c0_12 = arith.constant 0 : index
    %c0_13 = arith.constant 0 : index
    %13 = vector.load %arg7[%c0_12, %c0_13] : memref<1x32xf32, #tpu.memory_space<vmem>>, vector<1x32xf32>
    %14 = vector.shape_cast %13 : vector<1x32xf32> to vector<32xf32>
    %15 = vector.shape_cast %14 : vector<32xf32> to vector<1x32xf32>
    %16 = vector.broadcast %15 : vector<1x32xf32> to vector<8x32xf32>
    %17 = arith.addf %12, %16 : vector<8x32xf32>
    %18 = arith.truncf %8 : vector<8x32xf32> to vector<8x32xbf16>
    %c0_14 = arith.constant 0 : index
    %c0_15 = arith.constant 0 : index
    %c0_16 = arith.constant 0 : index
    %19 = vector.load %arg8[%c0_14, %c0_15, %c0_16] : memref<1x8x32xbf16, #tpu.memory_space<vmem>>, vector<1x8x32xbf16>
    %20 = vector.shape_cast %19 : vector<1x8x32xbf16> to vector<8x32xbf16>
    %21 = vector.shape_cast %18 : vector<8x32xbf16> to vector<1x8x32xbf16>
    tpu.vector_store %arg8[%c0_14, %c0_15, %c0_16], %21 {strides = array<i32>} : memref<1x8x32xbf16, #tpu.memory_space<vmem>>, vector<1x8x32xbf16>,
    %22 = arith.truncf %17 : vector<8x32xf32> to vector<8x32xbf16>
    %c0_17 = arith.constant 0 : index
    %c0_18 = arith.constant 0 : index
    %c0_19 = arith.constant 0 : index
    %23 = vector.load %arg9[%c0_17, %c0_18, %c0_19] : memref<1x8x32xbf16, #tpu.memory_space<vmem>>, vector<1x8x32xbf16>
    %24 = vector.shape_cast %23 : vector<1x8x32xbf16> to vector<8x32xbf16>
    %25 = vector.shape_cast %22 : vector<8x32xbf16> to vector<1x8x32xbf16>
    tpu.vector_store %arg9[%c0_17, %c0_18, %c0_19], %25 {strides = array<i32>} : memref<1x8x32xbf16, #tpu.memory_space<vmem>>, vector<1x8x32xbf16>,
    return
  }
  func.func @transform_0(%arg0: i32, %arg1: i32) -> (i32, i32, i32) {
    %c0_i32 = arith.constant 0 : i32
    %c0_i32_0 = arith.constant 0 : i32
    return %arg0, %arg1, %c0_i32 : i32, i32, i32
  }
  func.func @transform_1(%arg0: i32, %arg1: i32) -> (i32, i32, i32) {
    %c0_i32 = arith.constant 0 : i32
    %c0_i32_0 = arith.constant 0 : i32
    return %arg0, %arg1, %c0_i32 : i32, i32, i32
  }
  func.func @transform_2(%arg0: i32, %arg1: i32) -> (i32, i32) {
    %c0_i32 = arith.constant 0 : i32
    %c0_i32_0 = arith.constant 0 : i32
    %c0_i32_1 = arith.constant 0 : i32
    return %c0_i32, %c0_i32_0 : i32, i32
  }
  func.func @transform_3(%arg0: i32, %arg1: i32) -> (i32, i32) {
    %c0_i32 = arith.constant 0 : i32
    %c0_i32_0 = arith.constant 0 : i32
    %c0_i32_1 = arith.constant 0 : i32
    return %c0_i32, %c0_i32_0 : i32, i32
  }
  func.func @transform_4(%arg0: i32, %arg1: i32) -> (i32, i32) {
    %c0_i32 = arith.constant 0 : i32
    %c0_i32_0 = arith.constant 0 : i32
    %c0_i32_1 = arith.constant 0 : i32
    return %c0_i32, %c0_i32_0 : i32, i32
  }
  func.func @transform_5(%arg0: i32, %arg1: i32) -> (i32, i32) {
    %c0_i32 = arith.constant 0 : i32
    %c0_i32_0 = arith.constant 0 : i32
    %c0_i32_1 = arith.constant 0 : i32
    return %c0_i32, %c0_i32_0 : i32, i32
  }
  func.func @transform_6(%arg0: i32, %arg1: i32) -> (i32, i32, i32) {
    %c0_i32 = arith.constant 0 : i32
    %c0_i32_0 = arith.constant 0 : i32
    return %arg0, %arg1, %c0_i32 : i32, i32, i32
  }
  func.func @transform_7(%arg0: i32, %arg1: i32) -> (i32, i32, i32) {
    %c0_i32 = arith.constant 0 : i32
    %c0_i32_0 = arith.constant 0 : i32
    return %arg0, %arg1, %c0_i32 : i32, i32, i32
  }
}

</mosaic_0001>

<bundles_post_ra>
// kernel: tpu_custom_call.1
= control target key start
LH: loop header
LB: loop body
LE: loop exit
PB: predicated region body
PF: predicated region fallthrough
CT: control target
= control target key end

     0   :  { %s1503_s0 = inlined_call_operand.hbm [shape: bf16[2,8,32], index: 0, kind: input, shape index: {}]   ;;  %s1504_s1 = inlined_call_operand.hbm [shape: bf16[2,8,32], index: 1, kind: input, shape index: {}]   ;;  %s1505_s2 = inlined_call_operand.hbm [shape: bf16[32,32], index: 2, kind: input, shape index: {}]   ;;  %s1506_s3 = inlined_call_operand.vmem [shape: f32[1,32], index: 3, kind: input, shape index: {}]   ;;  %s1507_s4 = inlined_call_operand.hbm [shape: bf16[32,32], index: 4, kind: input, shape index: {}]   ;;  %s1508_s5 = inlined_call_operand.vmem [shape: f32[1,32], index: 5, kind: input, shape index: {}]   ;;  %s1509_s6 = inlined_call_operand.hbm [shape: bf16[2,8,32], index: 6, kind: output, shape index: {0}]   ;;  %s1510_s7 = inlined_call_operand.hbm [shape: bf16[2,8,32], index: 7, kind: output, shape index: {1}]  }
   0x1   :  { %1518 = sst [smem:[#allocation23_spill]] %s1505_s2 }
   0x2   :  { %1519 = sst [smem:[#allocation24_spill]] %s1507_s4 }
   0x3   :  { %13 = vsyncpa [#allocation3], 0 }
   0x4   :  { %15 = vsyncpa [#allocation3 + $0x1], 0 }
   0x5   :  { %16 = vsyncpa [#allocation6], 0 }
   0x6   :  { %18 = vsyncpa [#allocation6 + $0x1], 0 }
   0x7   :  { %19 = vsyncpa [#allocation9], 0 }
   0x8   :  { %20 = vsyncpa [#allocation4], 0 }
   0x9   :  { %22 = vsyncpa [#allocation4 + $0x1], 0 }
   0xa   :  { %23 = vsyncpa [#allocation12], 0 }
   0xb   :  { %25 = vsyncpa [#allocation12 + $0x1], 0  ;;  %s1172_s24 = smov 0   ;;  %s1174_s25 = smov 0  }
   0xc   :  { %s1176_s26 = smov 0   ;;  %s1178_s27 = smov 0  }
   0xd   :  { %s1180_s28 = smov 0   ;;  %s1182_s29 = smov 0  }
   0xe LB: > { %1520 = sst [smem:[#allocation19_spill]] %s1116_s28  ;;  %s1203_s30 = sadd.s32 4294967295, %s1120_s29   ;;  %s1120_s29 = sphi %s1182_s29, %s31_s29   ;;  %s1116_s28 = sphi %s1180_s28, %s1545_s28   ;;  %s1112_s27 = sphi %s1178_s27, %s1544_s27   ;;  %s1108_s26 = sphi %s1176_s26, %s1548_s26   ;;  %s1104_s25 = sphi %s1174_s25, %s1547_s25   ;;  %s1100_s24 = sphi %s1172_s24, %s1546_s24  }
   0xf   : > { %s725_s8 = sadd.s32 4294967294, %s1120_s29   ;;  %p65_p0 = scmp.ne.s32.totalorder %s1104_s25, %s1100_s24 }
  0x10   : > { %p1511_p1 = scmp.eq.s32.totalorder %s1203_s30, 0  ;;  %p209_p3 = scmp.eq.s32.totalorder %s725_s8, 1 }
  0x11   : > { %p726_p5 = scmp.ge.s32.totalorder %s1120_s29, 1  ;;  %p244_p7 = scmp.lt.s32.totalorder %s1120_s29, 3 }
  0x12   : > { %p1212_p4 = por %p1511_p1, %p65_p0  ;;  %p1217_p6 = por %p209_p3, %p65_p0 }
  0x13   : > { %p1222_p8 = pnand %p726_p5, %p244_p7  ;;  %s1122_s12 = smov [#allocation7]  }
  0x14   : > { %s1521_s9 = scalar_select %p1212_p4, 1, 0 }
  0x15   : > { %s1522_s10 = scalar_select %p1217_p6, 1, 0 }
  0x16   : > { %s1524_s11 = scalar_select %p1222_p8, 1, 0 }
  0x17   : > { %1523 = sst [smem:[#allocation20_spill]] %s1522_s10  ;;  %s256_s13 = sshll.u32 %s1122_s12, 4  ;;  %s1226_s13 = int_to_ptr.vmem [resolvable:$true] %s256_s13 }
  0x18   : > { %p793_p9 = pneg %p1222_p8  ;;  %s1123_s15 = smov [#allocation8]  }
  0x19   : > { %s272_s16 = sshll.u32 %s1123_s15, 4  ;;  %s1526_s2 = sld [smem:[#allocation23_spill]]  ;;  %s1237_s16 = int_to_ptr.vmem [resolvable:$true] %s272_s16 }
  0x1a   : > { %p1233_p11 = pnand %p793_p9, %p1511_p1 }
  0x1c   : > { %p880_p13 = pneg %p1233_p11 }
  0x1f   : > { %s878_s19 = scalar_lea.hbm %s1526_s2, 256 }
  0x20   : > { %p879_p12 = scmp.ne.s32.totalorder %s1526_s2, %s878_s19  ;;  %p885_p5 = scmp.lt.u32.totalorder %s878_s19, %s1526_s2 }
  0x22   : > { %p881_p0 = pnand %p880_p13, %p879_p12 }
  0x24   : > { %p882_p3 = pneg %p881_p0 }
  0x26   : > { %p887_p7 = pnand %p885_p5, %p882_p3 }
  0x28   : > { %890 = shalt.err (!%p887_p7)
}
  0x29   : > { %s891_s8 = scalar_lea.vmem %s1226_s13, 256  ;;  %p899_p2 = scmp.lt.s32.totalorder %s1226_s13, %s1226_s13 }
  0x2a   : > { %p892_p9 = scmp.ne.s32.totalorder %s1226_s13, %s891_s8  ;;  %p900_p12 = scmp.lt.s32.totalorder %s891_s8, %s891_s8 }
  0x2c   : > { %p894_p10 = pnand %p892_p9, %p880_p13  ;;  %p901_p0 = por %p900_p12, %p899_p2 }
  0x2e   : > { %p895_p1 = pneg %p894_p10 }
  0x30   : > { %p902_p6 = pnand %p901_p0, %p895_p1 }
  0x32   : > { %905 = shalt.err (!%p902_p6)
}
  0x33   : > { %s1124_s12 = smov 64   ;;  %s1125_s15 = smov 4  }
  0x34   : > { %796 = dma.hbm_to_vmem [thread:$0]  (!%p1233_p11), %s1526_s2, 256, %s1226_s13, [#allocation6], %s1124_s12, %s1124_s12, %s1125_s15  }
  0x35   : > { %s1527_s4 = sld [smem:[#allocation24_spill]] }
  0x3b   : > { %s906_s21 = scalar_lea.hbm %s1527_s4, 256 }
  0x3c   : > { %p907_p2 = scmp.ne.s32.totalorder %s1527_s4, %s906_s21  ;;  %p913_p10 = scmp.lt.u32.totalorder %s906_s21, %s1527_s4 }
  0x3e   : > { %p909_p1 = pnand %p907_p2, %p880_p13 }
  0x40   : > { %p910_p6 = pneg %p909_p1 }
  0x42   : > { %p915_p3 = pnand %p913_p10, %p910_p6 }
  0x44   : > { %918 = shalt.err (!%p915_p3)
}
  0x45   : > { %s919_s13 = scalar_lea.vmem %s1237_s16, 256  ;;  %p927_p12 = scmp.lt.s32.totalorder %s1237_s16, %s1237_s16 }
  0x46   : > { %p920_p5 = scmp.ne.s32.totalorder %s1237_s16, %s919_s13  ;;  %p928_p0 = scmp.lt.s32.totalorder %s919_s13, %s919_s13 }
  0x48   : > { %p922_p7 = pnand %p920_p5, %p880_p13  ;;  %p929_p2 = por %p928_p0, %p927_p12 }
  0x4a   : > { %p923_p9 = pneg %p922_p7 }
  0x4c   : > { %p930_p1 = pnand %p929_p2, %p923_p9 }
  0x4e   : > { %933 = shalt.err (!%p930_p1)
}
  0x4f   : > { %799 = dma.hbm_to_vmem [thread:$0]  (!%p1233_p11), %s1527_s4, 256, %s1237_s16, [#allocation9], %s1124_s12, %s1124_s12, %s1125_s15  }
  0x50   : > { %s43_s18 = sadd.s32 1, %s1116_s28  ;;  %s52_s19 = sadd.s32 1, %s1108_s26 }
  0x51   : > { %p45_p13 = scmp.ge.s32.totalorder %s43_s18, 2  ;;  %p59_p6 = scmp.ne.s32.totalorder %s1108_s26, %s1104_s25 }
  0x52   : > { %p60_p10 = scmp.eq.s32.totalorder %s1120_s29, 0  ;;  %p816_p3 = scmp.lt.s32.totalorder %s1120_s29, 2 }
  0x53   : > { %s1550_s18 = smov (%p45_p13, %s43_s18), 0  ;;  %p1529_p7 = scmp.eq.s32.totalorder %s1203_s30, 1 }
  0x54   : > { %1528 = sst [smem:[#allocation21_spill]] %s1550_s18  ;;  %p61_p5 = por %p60_p10, %p59_p6 }
  0x55   : > { %p1301_p9 = por %p1529_p7, %p59_p6  ;;  %s47_s20 = ssub.s32 %s1116_s28, %s1550_s18 }
  0x56   : > { %s289_s21 = sand.u32 1, %s1108_s26   ;;  %p50_p12 = scmp.eq.s32.totalorder %s47_s20, 0 }
  0x57   : > { %s1530_s14 = scalar_select %p1301_p9, 1, 0 }
  0x58   : > { %s1308_s16 = sshll.u32 %s289_s21, 2  ;;  %s731_s12 = sshll.u32 %s1116_s28, 6 }
  0x59   : > { %s1312_s15 = scalar_select %p50_p12, %s1108_s26, %s52_s19  }
  0x5a   : > { %s1317_s8 = scalar_lea.hbm %s1503_s0, %s731_s12  ;;  %s293_s13 = scalar_lea.vmem [#allocation2], %s1308_s16 }
  0x5b   : > { %1531 = sst [smem:[#allocation22_spill]] %s1312_s15  ;;  %s301_s10 = sshll.u32 %s293_s13, 4  ;;  %s1326_s10 = int_to_ptr.vmem [resolvable:$true] %s301_s10 }
  0x5c   : > { %p1322_p11 = pnand %p816_p3, %p61_p5  ;;  %s1331_s22 = scalar_lea.hbm %s1504_s1, %s731_s12 }
  0x5d   : > { %s290_s23 = scalar_lea.sflag [#allocation3], %s289_s21  ;;  %s934_s2 = scalar_lea.hbm %s1317_s8, 64 }
  0x5e   : > { %p935_p0 = scmp.ne.s32.totalorder %s1317_s8, %s934_s2  ;;  %p936_p2 = pneg %p1322_p11 }
  0x5f   : > { %s939_s18 = scalar_lea.hbm %s1503_s0, 128  ;;  %p940_p6 = scmp.lt.u32.totalorder %s1317_s8, %s1503_s0 }
  0x60   : > { %p937_p1 = pnand %p936_p2, %p935_p0  ;;  %p941_p10 = scmp.lt.u32.totalorder %s939_s18, %s934_s2 }
  0x61   : > { %p943_p5 = scmp.lt.u32.totalorder %s934_s2, %s1317_s8 }
  0x62   : > { %p938_p13 = pneg %p937_p1  ;;  %p942_p3 = por %p941_p10, %p940_p6 }
  0x64   : > { %p944_p7 = por %p943_p5, %p942_p3 }
  0x66   : > { %p945_p12 = pnand %p944_p7, %p938_p13 }
  0x68   : > { %948 = shalt.err (!%p945_p12)
}
  0x69   : > { %s949_s21 = scalar_lea.vmem %s1326_s10, 64  ;;  %s1126_s4 = smov [#allocation2]  }
  0x6a   : > { %p950_p0 = scmp.ne.s32.totalorder %s1326_s10, %s949_s21  ;;  %s954_s12 = sshll.u32 %s1126_s4, 4  ;;  %s955_s12 = int_to_ptr.vmem [resolvable:$false] %s954_s12 }
  0x6b   : > { %s956_s28 = scalar_lea.vmem %s955_s12, 128  ;;  %p957_p4 = scmp.lt.s32.totalorder %s1326_s10, %s955_s12 }
  0x6c   : > { %p952_p1 = pnand %p950_p0, %p936_p2  ;;  %p958_p6 = scmp.lt.s32.totalorder %s956_s28, %s949_s21 }
  0x6e   : > { %p953_p9 = pneg %p952_p1  ;;  %p959_p10 = por %p958_p6, %p957_p4 }
  0x70   : > { %p960_p3 = pnand %p959_p10, %p953_p9 }
  0x72   : > { %963 = shalt.err (!%p960_p3)
}
  0x73   : > { %803 = dma.hbm_to_vmem [thread:$0]  (!%p1322_p11), %s1317_s8, 64, %s1326_s10, %s290_s23  }
  0x74   : > { %s308_s2 = sand.u32 1, %s1120_s29   ;;  %s312_s18 = scalar_lea.vmem [#allocation5], %s1308_s16 }
  0x75   : > { %s320_s15 = sshll.u32 %s312_s18, 4  ;;  %s309_s19 = scalar_lea.sflag [#allocation6], %s308_s2  ;;  %s321_s15 = int_to_ptr.vmem [resolvable:$true] %s320_s15 }
  0x76   : > { %s964_s20 = scalar_lea.hbm %s1331_s22, 64  ;;  %s969_s4 = scalar_lea.hbm %s1504_s1, 128 }
  0x77   : > { %p965_p4 = scmp.ne.s32.totalorder %s1331_s22, %s964_s20  ;;  %p970_p5 = scmp.lt.u32.totalorder %s1331_s22, %s1504_s1 }
  0x78   : > { %p971_p7 = scmp.lt.u32.totalorder %s969_s4, %s964_s20  ;;  %p973_p0 = scmp.lt.u32.totalorder %s964_s20, %s1331_s22 }
  0x79   : > { %p967_p9 = pnand %p965_p4, %p936_p2 }
  0x7a   : > { %p972_p12 = por %p971_p7, %p970_p5 }
  0x7b   : > { %p968_p13 = pneg %p967_p9 }
  0x7c   : > { %p974_p1 = por %p973_p0, %p972_p12 }
  0x7e   : > { %p975_p6 = pnand %p974_p1, %p968_p13 }
  0x80   : > { %978 = shalt.err (!%p975_p6)
}
  0x81   : > { %s979_s16 = scalar_lea.vmem %s321_s15, 64  ;;  %s1127_s8 = smov [#allocation5]  }
  0x82   : > { %p980_p10 = scmp.ne.s32.totalorder %s321_s15, %s979_s16  ;;  %s984_s10 = sshll.u32 %s1127_s8, 4  ;;  %s985_s10 = int_to_ptr.vmem [resolvable:$false] %s984_s10 }
  0x83   : > { %s986_s23 = scalar_lea.vmem %s985_s10, 128  ;;  %p987_p9 = scmp.lt.s32.totalorder %s321_s15, %s985_s10 }
  0x84   : > { %p982_p3 = pnand %p980_p10, %p936_p2  ;;  %p988_p8 = scmp.lt.s32.totalorder %s986_s23, %s979_s16 }
  0x86   : > { %p983_p4 = pneg %p982_p3  ;;  %p989_p5 = por %p988_p8, %p987_p9 }
  0x88   : > { %p990_p7 = pnand %p989_p5, %p983_p4 }
  0x8a   : > { %993 = shalt.err (!%p990_p7)
}
  0x8b   : > { %806 = dma.hbm_to_vmem [thread:$0]  (!%p1322_p11), %s1331_s22, 64, %s321_s15, %s309_s19  }
  0x8c   : > { %p1533_p13 = scmp.ne.s32.totalorder %s1524_s11, 0 }
  0x8d   : > { %s1382_s2 = sand.u32 (!%p1533_p13), 1, %s1104_s25   ;;  %p1534_p8 = scmp.ne.s32.totalorder (!%p1533_p13), %s1521_s9, 0 }
  0x8e   : > { %329 = sbr.rel (%p1533_p13) target bundleno = 423 (0x1a7), region = 44  ;;  %s1385_s18 = sshll.u32 (!%p1533_p13), %s1382_s2, 2 }
  0x8f   : > { %s332_s20 = scalar_lea.sflag (!%p1533_p13), [#allocation3], %s1382_s2  ;;  %s335_s13 = scalar_lea.vmem (!%p1533_p13), [#allocation2], %s1385_s18 }
  0x95   : > { %1075 = dma.done.wait (%p1534_p8), %s332_s20, 64  }
  0x96   : > { %1077 = vsyncadd (%p1534_p8), %s332_s20, 4294967232  ;;  %s340_s11 = sand.u32 1, %s1203_s30   ;;  %s344_s22 = scalar_lea.vmem [#allocation5], %s1385_s18 }
  0x97   : > { %s341_s17 = scalar_lea.sflag [#allocation6], %s340_s11 }
  0x98   : > { %1079 = dma.done.wait (%p1534_p8), %s341_s17, 64  }
  0x99   : > { %1081 = vsyncadd (%p1534_p8), %s341_s17, 4294967232  ;;  %p1535_p11 = scmp.eq.s32.totalorder %s1203_s30, 0 }
  0x9b   : > { %1083 = dma.done.wait (%p1535_p11), [#allocation6], 256   ;;  %p1536_p2 = pmov %p1535_p11 }
  0x9d   : > { %1085 = vsyncadd (%p1536_p2), [#allocation6], 4294967040  ;;  %p1537_p12 = pmov %p1536_p2 }
  0x9e   : > { %p1538_p0 = pmov %p1536_p2 }
  0x9f   : > { %1087 = dma.done.wait (%p1537_p12), [#allocation9], 256  }
  0xa0   : > { %1089 = vsyncadd (%p1538_p0), [#allocation9], 4294967040  ;;  %v1128_v0 = vmov 0.0   ;;  %vm1129_vm0 = vmmov 0   ;;  %v874_v1 = vld [vmem:[#allocation7] sm:$0xff]   ;;  %v875_v2 = vld [vmem:[#allocation8] sm:$0xff]  }
  0xa1   : > { %761 = vmatprep.subr.bf16.mxu0 %v1128_v0  ;;  %769 = vmatprep.subr.bf16.mxu1 %v1128_v0  ;;  %v876_v3 = vld [vmem:[#allocation7 + $0x8] sm:$0xff]   ;;  %v877_v4 = vld [vmem:[#allocation8 + $0x8] sm:$0xff]   ;;  %v394_v5 = vld [vmem:[%s335_s13] sm:$0xf]  ;;  %vm418_vm1 = vcmask 261120   ;;  %s751_s21 = sshll.u32 %s1112_s27, 6 }
  0xa2   : > { %765 = vmatprep.mubr.msk.bf16.mxu0 %vm1129_vm0, %v1128_v0  ;;  %773 = vmatprep.mubr.msk.bf16.mxu1 %vm1129_vm0, %v1128_v0  ;;  %v462_v6 = vld [vmem:[%s344_s22] sm:$0xf]  ;;  %v741_v7 = vld [vmem:[%s1506_s3] ss:$0 sm:$0xff]  ;;  %s385_s4 = scalar_lea.vmem [#allocation10], %s1385_s18  ;;  %s392_s28 = scalar_lea.vmem [#allocation11], %s1385_s18 }
  0xa3   : > { %762 = vmatpush3.bf16.msra.mxu0 %v874_v1  ;;  %770 = vmatpush3.bf16.msra.mxu1 %v875_v2  ;;  %v745_v8 = vld [vmem:[%s1508_s5] ss:$0 sm:$0xff]  ;;  %s554_s12 = sshll.u32 %s385_s4, 4  ;;  %s568_s16 = sshll.u32 %s392_s28, 4  ;;  %vm530_vm2 = vcmask 257024   ;;  %s1423_s12 = int_to_ptr.vmem [resolvable:$true] %s554_s12  ;;  %s1430_s16 = int_to_ptr.vmem [resolvable:$true] %s568_s16 }
  0xa4   : > { %763 = vmatprep.subr.bf16.mxu0 %v1128_v0  ;;  %771 = vmatprep.subr.bf16.mxu1 %v1128_v0  ;;  %s1421_s23 = scalar_lea.hbm %s1509_s6, %s751_s21  ;;  %s1428_s13 = scalar_lea.hbm %s1510_s7, %s751_s21 }
  0xa5   : > { %s535_s11 = scalar_lea.sflag [#allocation4], %s1382_s2  ;;  %s994_s17 = scalar_lea.vmem %s1423_s12, 64 }
  0xa6   : > { %p995_p1 = scmp.ne.s32.totalorder %s1423_s12, %s994_s17  ;;  %p1539_p6 = scmp.ne.s32.totalorder %s1530_s14, 0 }
  0xa7   : > { %764 = vmatpush3.bf16.msra.mxu0 %v876_v3  ;;  %772 = vmatpush3.bf16.msra.mxu1 %v877_v4  ;;  %s1130_s22 = smov [#allocation10]  }
  0xa8   : > { %p996_p10 = pnand %p995_p1, %p1539_p6  ;;  %s998_s30 = sshll.u32 %s1130_s22, 4  ;;  %s999_s30 = int_to_ptr.vmem [resolvable:$false] %s998_s30 }
  0xa9   : > { %s1000_s9 = scalar_lea.vmem %s999_s30, 128  ;;  %p1001_p4 = scmp.lt.s32.totalorder %s1423_s12, %s999_s30 }
  0xaa   : > { %766 = vmatmul.mubr.msk.bf16.vlgmr.msra.gmra.mrb[0].mxu0 %vm418_vm1, %v394_v5  ;;  %774 = vmatmul.mubr.msk.bf16.vlgmr.msra.gmra.mrb[0].mxu1 %vm418_vm1, %v462_v6  ;;  %p997_p3 = pneg %p996_p10  ;;  %p1002_p9 = scmp.lt.s32.totalorder %s1000_s9, %s994_s17 }
  0xac   : > { %p1003_p5 = por %p1002_p9, %p1001_p4 }
  0xae   : > { %p1004_p7 = pnand %p1003_p5, %p997_p3 }
 0x17d   : > { %v456_v9 = vpop.f32.mrb[0].mxu0  ;;  %v523_v11 = vpop.f32.mrb[0].mxu1 }
 0x17e   : > { %v457_v10 = vadd.f32 %v741_v7, %v456_v9  ;;  %v767_v12 = vpop.f32.mrb[1].mxu0  ;;  %v524_v13 = vadd.f32 %v745_v8, %v523_v11  ;;  %v775_v14 = vpop.f32.mrb[1].mxu1 }
 0x17f   : > { %v459_v15 = vpop.f32.mrb[2].mxu0  ;;  %v526_v17 = vpop.f32.mrb[2].mxu1 }
 0x180   : > { %v529_v16 = vpack.c.bf16 %v457_v10, %v457_v10  ;;  %v768_v18 = vpop.f32.mrb[3].mxu0  ;;  %v532_v19 = vpack.c.bf16 %v524_v13, %v524_v13  ;;  %v776_v20 = vpop.f32.mrb[3].mxu1 }
 0x182   : > { %531 = vst.msk [vmem:[%s385_s4] sm:$0xf] %vm530_vm2, %v529_v16 }
 0x183   : > { %1007 = shalt.err (!%p1004_p7)
}
 0x184   : > { %s1008_s15 = scalar_lea.hbm %s1421_s23, 64  ;;  %s1012_s4 = scalar_lea.hbm %s1509_s6, 128 }
 0x185   : > { %p1009_p13 = scmp.ne.s32.totalorder %s1421_s23, %s1008_s15  ;;  %p1013_p2 = scmp.lt.u32.totalorder %s1421_s23, %s1509_s6 }
 0x186   : > { %p1014_p12 = scmp.lt.u32.totalorder %s1012_s4, %s1008_s15  ;;  %p1016_p1 = scmp.lt.u32.totalorder %s1008_s15, %s1421_s23 }
 0x187   : > { %p1010_p8 = pnand %p1009_p13, %p1539_p6 }
 0x188   : > { %p1015_p0 = por %p1014_p12, %p1013_p2 }
 0x189   : > { %p1011_p11 = pneg %p1010_p8 }
 0x18a   : > { %p1017_p10 = por %p1016_p1, %p1015_p0 }
 0x18c   : > { %p1018_p3 = pnand %p1017_p10, %p1011_p11 }
 0x18e   : > { %1021 = shalt.err (!%p1018_p3)
}
 0x18f   : > { %789 = dma.vmem_to_hbm [thread:$0]  (%p1539_p6), %s1423_s12, 64, %s1421_s23, %s535_s11   ;;  %533 = vst.msk [vmem:[%s392_s28] sm:$0xf] %vm530_vm2, %v532_v19 }
 0x190   : > { %s540_s27 = scalar_lea.sflag [#allocation12], %s1382_s2  ;;  %s1022_s20 = scalar_lea.vmem %s1430_s16, 64 }
 0x191   : > { %p1023_p4 = scmp.ne.s32.totalorder %s1430_s16, %s1022_s20  ;;  %s1131_s17 = smov [#allocation11]  }
 0x192   : > { %s1026_s22 = sshll.u32 %s1131_s17, 4  ;;  %s1027_s22 = int_to_ptr.vmem [resolvable:$false] %s1026_s22 }
 0x193   : > { %p1024_p9 = pnand %p1023_p4, %p1539_p6  ;;  %s1028_s30 = scalar_lea.vmem %s1027_s22, 128 }
 0x194   : > { %p1029_p7 = scmp.lt.s32.totalorder %s1430_s16, %s1027_s22  ;;  %p1030_p13 = scmp.lt.s32.totalorder %s1028_s30, %s1022_s20 }
 0x195   : > { %p1025_p5 = pneg %p1024_p9 }
 0x196   : > { %p1031_p8 = por %p1030_p13, %p1029_p7 }
 0x198   : > { %p1032_p11 = pnand %p1031_p8, %p1025_p5 }
 0x19a   : > { %1035 = shalt.err (!%p1032_p11)
}
 0x19b   : > { %s1036_s2 = scalar_lea.hbm %s1428_s13, 64  ;;  %s1040_s28 = scalar_lea.hbm %s1510_s7, 128 }
 0x19c   : > { %p1037_p2 = scmp.ne.s32.totalorder %s1428_s13, %s1036_s2  ;;  %p1041_p1 = scmp.lt.u32.totalorder %s1428_s13, %s1510_s7 }
 0x19d   : > { %p1042_p10 = scmp.lt.u32.totalorder %s1040_s28, %s1036_s2  ;;  %p1044_p4 = scmp.lt.u32.totalorder %s1036_s2, %s1428_s13 }
 0x19e   : > { %p1038_p12 = pnand %p1037_p2, %p1539_p6 }
 0x19f   : > { %p1043_p3 = por %p1042_p10, %p1041_p1 }
 0x1a0   : > { %p1039_p0 = pneg %p1038_p12 }
 0x1a1   : > { %p1045_p9 = por %p1044_p4, %p1043_p3 }
 0x1a3   : > { %p1046_p5 = pnand %p1045_p9, %p1039_p0 }
 0x1a5   : > { %1049 = shalt.err (!%p1046_p5)
}
 0x1a6   : > { %790 = dma.vmem_to_hbm [thread:$0]  (%p1539_p6), %s1430_s16, 64, %s1428_s13, %s540_s27  }
 0x1a7 PF: > { %s1540_s9 = sld [smem:[#allocation20_spill]]  ;;  %s580_s15 = sand.u32 1, %s1100_s24  }
 0x1a8   : > { %p1542_p13 = scmp.ge.s32.totalorder %s1120_s29, 2  ;;  %s581_s19 = scalar_lea.sflag [#allocation4], %s580_s15 }
 0x1ad   : > { %p1541_p7 = scmp.ne.s32.totalorder %s1540_s9, 0 }
 0x1af   : > { %p808_p8 = pnand %p1542_p13, %p1541_p7 }
 0x1b1   : > { %1091 = dma.done.wait (!%p808_p8), %s581_s19, 64  }
 0x1b2   : > { %1093 = vsyncadd (!%p808_p8), %s581_s19, 4294967232  ;;  %s590_s21 = scalar_lea.sflag [#allocation12], %s580_s15 }
 0x1b3   : > { %1095 = dma.done.wait (!%p808_p8), %s590_s21, 64  }
 0x1b4   : > { %1097 = vsyncadd (!%p808_p8), %s590_s21, 4294967232  ;;  %s31_s29 = sadd.s32 1, %s1120_s29   ;;  %s1543_s14 = sld [smem:[#allocation22_spill]] }
 0x1b5   : > { %p28_p11 = scmp.ge.s32.totalorder %s31_s29, 4   ;;  %s1544_s27 = sld [smem:[#allocation19_spill]] }
 0x1b6   : > { %s1545_s28 = sld [smem:[#allocation21_spill]]  ;;  %s1546_s24 = smov %s1104_s25 }
 0x1b7   : > { %s1547_s25 = smov %s1108_s26  ;;  %30 = sbr.rel (!%p28_p11) target bundleno = 14 (0xe), region = 127 }
 0x1ba   : > { %s1548_s26 = smov %s1543_s14 }
 0x1be   :  { %595 = vsyncpa [#allocation3], 1 }
 0x1bf   :  { %597 = vsyncpa [#allocation3 + $0x1], 1 }
 0x1c0   :  { %598 = vsyncpa [#allocation6], 1 }
 0x1c1   :  { %600 = vsyncpa [#allocation6 + $0x1], 1 }
 0x1c2   :  { %601 = vsyncpa [#allocation9], 1 }
 0x1c3   :  { %602 = vsyncpa [#allocation4], 1 }
 0x1c4   :  { %604 = vsyncpa [#allocation4 + $0x1], 1 }
 0x1c5   :  { %605 = vsyncpa [#allocation12], 1 }
 0x1c6   :  { %607 = vsyncpa [#allocation12 + $0x1], 1 }

</bundles_post_ra>
